<compile_context>
chip_gen: v7x
topology: tpu7x:2x2x1
jax: 0.10.0
libtpu: 0.0.40
codegen_flags: <defaults>
</compile_context>

<pallas_src>
import jax
import jax.numpy as jnp
from jax.experimental import pallas as pl
from jax.experimental.pallas import tpu as pltpu


def _round_up(x, m):
    return ((x + m - 1) // m) * m


def _embed_kernel(patches_ref, w_ref, pos_ref, out_ref):
    # patches_ref: (1, TN, Kp) bf16   w_ref: (Kp, D) bf16 (grid-invariant)
    # pos_ref:     (TN, D)     f32    out_ref: (1, TN, D)
    acc = jnp.dot(patches_ref[0], w_ref[...],
                  preferred_element_type=jnp.float32)          # MXU, f32 accumulate
    out_ref[0] = (acc + pos_ref[...]).astype(out_ref.dtype)    # bias folded into pos


def siglip_vision_embeddings(pixel_values, conv_weight, conv_bias, pos_embedding,
                             patch_size):
    """
    pixel_values : (B, C, H, W)  float32   (NCHW, like PyTorch)
    conv_weight  : (D, C, P, P)  float32   (PyTorch Conv2d weight layout)
    conv_bias    : (D,)          float32
    pos_embedding: (N, D)        float32   (nn.Embedding weight, N = num_patches)
    returns      : (B, N, D)     float32
    """
    B, C, H, W = pixel_values.shape
    D = conv_weight.shape[0]
    P = patch_size
    gh, gw = H // P, W // P
    N = gh * gw
    K = C * P * P

    # --- glue: extract non-overlapping patches, flatten in (C, Ph, Pw) order ---
    # (matches PyTorch "valid" conv with stride == kernel: floor-truncate H/W)
    # TODO(synk): the transpose is a full HBM pass done in XLA; could be moved
    # in-kernel (XLU rearrange on the VMEM tile) for very large images.
    x = pixel_values[:, :, :gh * P, :gw * P].reshape(B, C, gh, P, gw, P)
    x = jnp.transpose(x, (0, 2, 4, 1, 3, 5))
    patches = x.reshape(B, N, K)

    # Flatten conv weight to (K, D): out[d] = sum_{c,ph,pw} w[d,c,ph,pw] * patch
    w_flat = conv_weight.reshape(D, K).T                       # (K, D)

    # Fold conv bias into the position embedding (both constants per call).
    pos_plus_bias = (pos_embedding + conv_bias[None, :]).astype(jnp.float32)

    # bf16 MXU operands (f32 accumulation inside the kernel).
    patches_bf = patches.astype(jnp.bfloat16)
    w_bf = w_flat.astype(jnp.bfloat16)

    # Zero-pad contraction dim K to a multiple of 128 (exact; unmasked loads).
    K_pad = _round_up(K, 128)
    if K_pad != K:
        patches_bf = jnp.pad(patches_bf, ((0, 0), (0, 0), (0, K_pad - K)))
        w_bf = jnp.pad(w_bf, ((0, K_pad - K), (0, 0)))

    # Tile N (<= 256 rows per step); pad N so it divides evenly (sliced off below).
    TN = min(256, _round_up(N, 8))
    N_pad = _round_up(N, TN)
    if N_pad != N:
        patches_bf = jnp.pad(patches_bf, ((0, 0), (0, N_pad - N), (0, 0)))
        pos_plus_bias = jnp.pad(pos_plus_bias, ((0, N_pad - N), (0, 0)))

    out = pl.pallas_call(
        _embed_kernel,
        out_shape=jax.ShapeDtypeStruct((B, N_pad, D), pixel_values.dtype),
        grid_spec=pltpu.PrefetchScalarGridSpec(
            num_scalar_prefetch=0,
            grid=(B, N_pad // TN),
            in_specs=[
                pl.BlockSpec((1, TN, K_pad), lambda b, n: (b, n, 0)),  # patch tile
                pl.BlockSpec((K_pad, D), lambda b, n: (0, 0)),         # weight (resident)
                pl.BlockSpec((TN, D), lambda b, n: (n, 0)),            # pos+bias tile
            ],
            out_specs=pl.BlockSpec((1, TN, D), lambda b, n: (b, n, 0)),
        ),
        compiler_params=pltpu.CompilerParams(
            dimension_semantics=("parallel", "parallel")),  # shard across v7x cores
    )(patches_bf, w_bf, pos_plus_bias)

    if N_pad != N:
        out = out[:, :N, :]
    return out


if __name__ == "__main__":
    # Small, module-consistent config:
    #   num_channels=3, image_size=16, patch_size=4 -> num_patches=16, hidden=32
    B, C, IMG, P, D = 2, 3, 16, 4, 32
    N = (IMG // P) ** 2

    key = jax.random.PRNGKey(0)
    k_px, k_w, k_b, k_pos = jax.random.split(key, 4)

    pixel_values = jax.random.normal(k_px, (B, C, IMG, IMG), dtype=jnp.float32)
    conv_weight = jax.random.normal(k_w, (D, C, P, P), dtype=jnp.float32) * 0.02
    conv_bias = jax.random.normal(k_b, (D,), dtype=jnp.float32) * 0.02
    pos_embedding = jax.random.normal(k_pos, (N, D), dtype=jnp.float32) * 0.02

    out = siglip_vision_embeddings(pixel_values, conv_weight, conv_bias,
                                   pos_embedding, patch_size=P)
    jax.block_until_ready(out)
    assert out.shape == (B, N, D)

    # Pure-JAX references (conv-as-matmul).
    x = pixel_values.reshape(B, C, IMG // P, P, IMG // P, P)
    x = jnp.transpose(x, (0, 2, 4, 1, 3, 5)).reshape(B, N, C * P * P)
    w_flat = conv_weight.reshape(D, -1).T

    # (a) bf16-rounded-input reference (matches kernel numerics closely).
    x_bf = x.astype(jnp.bfloat16).astype(jnp.float32)
    w_bf = w_flat.astype(jnp.bfloat16).astype(jnp.float32)
    ref_bf = x_bf @ w_bf + conv_bias[None, None, :] + pos_embedding[None]
    assert jnp.allclose(out, ref_bf, atol=1e-3, rtol=1e-3)

    # (b) full-f32 PyTorch-equivalent reference (loose tol: bf16 MXU operands).
    ref_f32 = x @ w_flat + conv_bias[None, None, :] + pos_embedding[None]
    assert jnp.allclose(out, ref_f32, atol=2e-2, rtol=2e-2)

    print("KERNEL_OK")
</pallas_src>

<mosaic_0001>
module attributes {stable_mosaic.version = 11 : i64} {
  func.func @_embed_kernel(%arg0: i32, %arg1: i32, %arg2: memref<1x16x128xbf16, #tpu.memory_space<vmem>>, %arg3: memref<128x32xbf16, #tpu.memory_space<vmem>>, %arg4: memref<16x32xf32, #tpu.memory_space<vmem>>, %arg5: memref<1x16x32xf32, #tpu.memory_space<vmem>>) attributes {dimension_semantics = [#tpu.dimension_semantics<parallel>, #tpu.dimension_semantics<parallel>], iteration_bounds = array<i64: 2, 1>, scalar_prefetch = 0 : i64, scratch_operands = 0 : i64, tpu.core_type = #tpu.core_type<tc>, window_params = [{transform_indices = @transform_0, window_bounds = array<i64: 1, 16, 128>}, {pipeline_mode = #tpu.pipeline_mode<synchronous>, transform_indices = @transform_1, window_bounds = array<i64: 128, 32>}, {transform_indices = @transform_2, window_bounds = array<i64: 16, 32>}, {transform_indices = @transform_3, window_bounds = array<i64: 1, 16, 32>}]} {
    %c0 = arith.constant 0 : index
    %c0_0 = arith.constant 0 : index
    %c0_1 = arith.constant 0 : index
    %0 = vector.load %arg2[%c0, %c0_0, %c0_1] : memref<1x16x128xbf16, #tpu.memory_space<vmem>>, vector<1x16x128xbf16>
    %1 = vector.shape_cast %0 : vector<1x16x128xbf16> to vector<16x128xbf16>
    %c0_2 = arith.constant 0 : index
    %c0_3 = arith.constant 0 : index
    %2 = vector.load %arg3[%c0_2, %c0_3] : memref<128x32xbf16, #tpu.memory_space<vmem>>, vector<128x32xbf16>
    %cst = arith.constant dense<0.000000e+00> : vector<16x32xf32>
    %3 = tpu.matmul %1, %2, %cst {dimension_numbers = #tpu.dot_dimension_numbers<[1], [0], [0], [1], [0, 0, 1, 1], [], []>} : vector<16x128xbf16>, vector<128x32xbf16>, vector<16x32xf32> -> vector<16x32xf32>
    %c0_4 = arith.constant 0 : index
    %c0_5 = arith.constant 0 : index
    %4 = vector.load %arg4[%c0_4, %c0_5] : memref<16x32xf32, #tpu.memory_space<vmem>>, vector<16x32xf32>
    %5 = arith.addf %3, %4 : vector<16x32xf32>
    %c0_6 = arith.constant 0 : index
    %c0_7 = arith.constant 0 : index
    %c0_8 = arith.constant 0 : index
    %6 = vector.load %arg5[%c0_6, %c0_7, %c0_8] : memref<1x16x32xf32, #tpu.memory_space<vmem>>, vector<1x16x32xf32>
    %7 = vector.shape_cast %6 : vector<1x16x32xf32> to vector<16x32xf32>
    %8 = vector.shape_cast %5 : vector<16x32xf32> to vector<1x16x32xf32>
    tpu.vector_store %arg5[%c0_6, %c0_7, %c0_8], %8 {strides = array<i32>} : memref<1x16x32xf32, #tpu.memory_space<vmem>>, vector<1x16x32xf32>,
    return
  }
  func.func @transform_0(%arg0: i32, %arg1: i32) -> (i32, i32, i32) {
    %c0_i32 = arith.constant 0 : i32
    %c0_i32_0 = arith.constant 0 : i32
    return %arg0, %arg1, %c0_i32 : i32, i32, i32
  }
  func.func @transform_1(%arg0: i32, %arg1: i32) -> (i32, i32) {
    %c0_i32 = arith.constant 0 : i32
    %c0_i32_0 = arith.constant 0 : i32
    %c0_i32_1 = arith.constant 0 : i32
    return %c0_i32, %c0_i32_0 : i32, i32
  }
  func.func @transform_2(%arg0: i32, %arg1: i32) -> (i32, i32) {
    %c0_i32 = arith.constant 0 : i32
    %c0_i32_0 = arith.constant 0 : i32
    return %arg1, %c0_i32 : i32, i32
  }
  func.func @transform_3(%arg0: i32, %arg1: i32) -> (i32, i32, i32) {
    %c0_i32 = arith.constant 0 : i32
    %c0_i32_0 = arith.constant 0 : i32
    return %arg0, %arg1, %c0_i32 : i32, i32, i32
  }
}

</mosaic_0001>

<bundles_post_ra>
// kernel: tpu_custom_call.1
= control target key start
LH: loop header
LB: loop body
LE: loop exit
PB: predicated region body
PF: predicated region fallthrough
CT: control target
= control target key end

     0   :  { %8 = vsyncpa [#allocation3], 0  ;;  %s823_s0 = inlined_call_operand.vmem [shape: bf16[2,16,128], index: 0, kind: input, shape index: {}]   ;;  %s824_s1 = inlined_call_operand.vmem [shape: bf16[128,32], index: 1, kind: input, shape index: {}]   ;;  %s825_s2 = inlined_call_operand.vmem [shape: f32[16,32], index: 2, kind: input, shape index: {}]   ;;  %s826_s3 = inlined_call_operand.hbm [shape: f32[2,16,32], index: 3, kind: output, shape index: {}]  }
   0x1   :  { %10 = vsyncpa [#allocation3 + $0x1], 0  ;;  %s678_s12 = smov 0   ;;  %s680_s13 = smov 0  }
   0x2   :  { %s682_s14 = smov 0   ;;  %s684_s15 = smov 0  }
   0x3   :  { %s686_s16 = smov 0   ;;  %s688_s17 = smov 0  }
   0x4 LB: > { %s451_s18 = sadd.s32 4294967295, %s651_s17   ;;  %s452_s19 = sadd.s32 4294967294, %s651_s17   ;;  %s651_s17 = sphi %s688_s17, %s16_s17   ;;  %s647_s16 = sphi %s686_s16, %s833_s16   ;;  %s643_s15 = sphi %s684_s15, %s832_s15   ;;  %s639_s14 = sphi %s682_s14, %s831_s14   ;;  %s635_s13 = sphi %s680_s13, %s830_s13   ;;  %s631_s12 = sphi %s678_s12, %s829_s12  }
   0x5   : > { %s28_s20 = sadd.s32 1, %s647_s16  ;;  %s112_s21 = sadd.s32 1, %s639_s14 }
   0x6   : > { %p30_p0 = scmp.ge.s32.totalorder %s28_s20, 2  ;;  %p122_p1 = scmp.ne.s32.totalorder %s639_s14, %s635_s13 }
   0x7   : > { %p123_p2 = scmp.eq.s32.totalorder %s451_s18, 1  ;;  %p128_p3 = scmp.ne.s32.totalorder %s635_s13, %s631_s12 }
   0x8   : > { %s835_s20 = smov (%p30_p0, %s28_s20), 0  ;;  %p129_p5 = scmp.eq.s32.totalorder %s452_s19, 1 }
   0x9   : > { %p718_p4 = por %p123_p2, %p122_p1  ;;  %s107_s23 = ssub.s32 %s647_s16, %s835_s20 }
   0xa   : > { %p456_p6 = scmp.ge.s32.totalorder %s651_s17, 1  ;;  %p110_p7 = scmp.eq.s32.totalorder %s107_s23, 0 }
   0xb   : > { %p725_p8 = por %p129_p5, %p128_p3  ;;  %p172_p9 = scmp.lt.s32.totalorder %s651_s17, 3 }
   0xc   : > { %s731_s25 = scalar_select %p110_p7, %s639_s14, %s112_s21  }
   0xd   : > { %p173_p10 = pnand %p456_p6, %p172_p9 }
   0xe   : > { %v564_v0 = vld [vmem:[%s824_s1] sm:$0xff] (!%p173_p10)   ;;  %v653_v1 = vmov (!%p173_p10), 0.0   ;;  %v565_v2 = vld [vmem:[%s824_s1 + $0x8] sm:$0xff] (!%p173_p10)   ;;  %vm654_vm0 = vmmov (!%p173_p10), 0   ;;  %p206_p11 = scmp.lt.s32.totalorder (!%p173_p10), %s643_s15, 1  ;;  %v566_v3 = vld [vmem:[%s824_s1 + $0x10] sm:$0xff] (!%p173_p10)  }
   0xf   : > { %176 = sbr.rel (%p173_p10) target bundleno = 278 (0x116), region = 32  ;;  %485 = vmatprep.subr.bf16.mxu0 (!%p173_p10), %v653_v1  ;;  %501 = vmatprep.mubr.msk.bf16.mxu0 (!%p173_p10), %vm654_vm0, %v653_v1  ;;  %v567_v4 = vld [vmem:[%s824_s1 + $0x18] sm:$0xff] (!%p173_p10)   ;;  %v568_v5 = vld [vmem:[%s824_s1 + $0x20] sm:$0xff] (!%p173_p10)   ;;  %v569_v6 = vld [vmem:[%s824_s1 + $0x28] sm:$0xff] (!%p173_p10)   ;;  %s475_s10 = sshll.u32 (!%p173_p10), %s643_s15, 8  ;;  %vm338_vm1 = vcmask (!%p173_p10), 261120  }
  0x10   : > { %486 = vmatpush3.bf16.msra.mxu0 (!%p173_p10), %v564_v0  ;;  %v570_v7 = vld [vmem:[%s824_s1 + $0x30] sm:$0xff] (!%p173_p10)   ;;  %v571_v8 = vld [vmem:[%s824_s1 + $0x38] sm:$0xff] (!%p173_p10)   ;;  %v241_v10 = vld [vmem:[%s825_s2] sm:$0xff] (!%p173_p10)  ;;  %s775_s21 = scalar_lea.hbm (!%p173_p10), %s826_s3, %s475_s10  ;;  %s655_s26 = smov (!%p173_p10), [#allocation2]  }
  0x11   : > { %487 = vmatprep.subr.bf16.mxu0 (!%p173_p10), %v653_v1  ;;  %v242_v12 = vld [vmem:[%s825_s2 + $0x8] sm:$0xff] (!%p173_p10)  ;;  %s577_s27 = sshll.u32 (!%p173_p10), %s655_s26, 4  ;;  %s578_s27 = int_to_ptr.vmem [resolvable:$false] %s577_s27 }
  0x12   : > { %s579_s28 = scalar_lea.vmem (!%p173_p10), %s578_s27, 512 }
  0x14   : > { %488 = vmatpush3.bf16.msra.mxu0 (!%p173_p10), %v565_v2 }
  0x15   : > { %489 = vmatprep.subr.bf16.mxu0 (!%p173_p10), %v653_v1 }
  0x16   : > { %s207_s30 = scalar_select %p206_p11, %s643_s15, 1 }
  0x18   : > { %s474_s6 = sshll.u32 %s207_s30, 3  ;;  %490 = vmatpush3.bf16.msra.mxu0 %v566_v3  ;;  %s202_s30 = sand.u32 1, %s635_s13  }
  0x19   : > { %s213_s9 = scalar_lea.vmem %s823_s0, %s474_s6  ;;  %491 = vmatprep.subr.bf16.mxu0 %v653_v1  ;;  %s457_s4 = sshll.u32 %s202_s30, 4 }
  0x1a   : > { %v572_v9 = vld [vmem:[%s213_s9] sm:$0xff]   ;;  %s204_s7 = scalar_lea.vmem [#allocation2], %s457_s4  ;;  %s777_s15 = scalar_lea.sflag [#allocation3], %s202_s30 }
  0x1b   : > { %s357_s8 = sshll.u32 %s204_s7, 4  ;;  %s770_s8 = int_to_ptr.vmem [resolvable:$true] %s357_s8 }
  0x1c   : > { %492 = vmatpush3.bf16.msra.mxu0 %v567_v4  ;;  %s573_s23 = scalar_lea.vmem %s770_s8, 256  ;;  %p580_p1 = scmp.lt.s32.totalorder %s770_s8, %s578_s27 }
  0x1d   : > { %493 = vmatprep.subr.bf16.mxu0 %v653_v1  ;;  %p574_p12 = scmp.ne.s32.totalorder %s770_s8, %s573_s23  ;;  %p581_p2 = scmp.lt.s32.totalorder %s579_s28, %s573_s23 }
  0x1f   : > { %p575_p13 = pnand %p574_p12, %p718_p4  ;;  %p582_p3 = por %p581_p2, %p580_p1 }
  0x20   : > { %494 = vmatpush3.bf16.msra.mxu0 %v568_v5 }
  0x21   : > { %495 = vmatprep.subr.bf16.mxu0 %v653_v1  ;;  %p576_p0 = pneg %p575_p13 }
  0x23   : > { %p583_p5 = pnand %p582_p3, %p576_p0 }
  0x24   : > { %496 = vmatpush3.bf16.msra.mxu0 %v569_v6 }
  0x25   : > { %497 = vmatprep.subr.bf16.mxu0 %v653_v1 }
  0x28   : > { %498 = vmatpush3.bf16.msra.mxu0 %v570_v7 }
  0x29   : > { %499 = vmatprep.subr.bf16.mxu0 %v653_v1 }
  0x2c   : > { %500 = vmatpush3.bf16.msra.mxu0 %v571_v8 }
  0x2f   : > { %502 = vmatmul.mubr.bf16.vlgmr.msra.gmra.mrb[0].mxu0 %v572_v9 }
 0x102   : > { %v331_v11 = vpop.f32.mrb[0].mxu0 }
 0x103   : > { %v332_v13 = vadd.f32 %v331_v11, %v241_v10  ;;  %v503_v14 = vpop.f32.mrb[1].mxu0 }
 0x104   : > { %v334_v15 = vpop.f32.mrb[2].mxu0 }
 0x105   : > { %339 = vst.msk [vmem:[%s204_s7] sm:$0xff] %vm338_vm1, %v332_v13  ;;  %v335_v16 = vadd.f32 %v334_v15, %v242_v12  ;;  %v504_v17 = vpop.f32.mrb[3].mxu0 }
 0x107   : > { %340 = vst.msk [vmem:[%s204_s7 + $0x8] sm:$0xff] %vm338_vm1, %v335_v16 }
 0x108   : > { %586 = shalt.err (!%p583_p5)
}
 0x109   : > { %s587_s29 = scalar_lea.hbm %s775_s21, 256  ;;  %s591_s5 = scalar_lea.hbm %s826_s3, 512 }
 0x10a   : > { %p588_p6 = scmp.ne.s32.totalorder %s775_s21, %s587_s29  ;;  %p592_p10 = scmp.lt.u32.totalorder %s775_s21, %s826_s3 }
 0x10b   : > { %p593_p11 = scmp.lt.u32.totalorder %s591_s5, %s587_s29  ;;  %p595_p13 = scmp.lt.u32.totalorder %s587_s29, %s775_s21 }
 0x10c   : > { %p589_p7 = pnand %p588_p6, %p718_p4 }
 0x10d   : > { %p594_p12 = por %p593_p11, %p592_p10 }
 0x10e   : > { %p590_p9 = pneg %p589_p7 }
 0x10f   : > { %p596_p0 = por %p595_p13, %p594_p12 }
 0x111   : > { %p597_p1 = pnand %p596_p0, %p590_p9 }
 0x113   : > { %600 = shalt.err (!%p597_p1)
}
 0x114   : > { %s656_s10 = smov 128   ;;  %s657_s11 = smov 8  }
 0x115   : > { %505 = dma.vmem_to_hbm [thread:$0]  (%p718_p4), %s770_s8, 256, %s775_s21, %s777_s15, %s656_s10, %s656_s10, %s657_s11  }
 0x116 PF: > { %p511_p2 = scmp.ge.s32.totalorder %s651_s17, 2  ;;  %s372_s18 = sand.u32 1, %s631_s12  }
 0x117   : > { %s373_s9 = scalar_lea.sflag [#allocation3], %s372_s18 }
 0x118   : > { %p508_p3 = pnand %p511_p2, %p725_p8 }
 0x11a   : > { %626 = dma.done.wait (!%p508_p3), %s373_s9, 256  }
 0x11b   : > { %628 = vsyncadd (!%p508_p3), %s373_s9, 4294967040  ;;  %s16_s17 = sadd.s32 1, %s651_s17   ;;  %s829_s12 = smov %s635_s13 }
 0x11c   : > { %p13_p5 = scmp.ge.s32.totalorder %s16_s17, 4   ;;  %s830_s13 = smov %s639_s14 }
 0x11d   : > { %s831_s14 = smov %s731_s25  ;;  %s832_s15 = smov %s647_s16 }
 0x11e   : > { %s833_s16 = smov %s835_s20  ;;  %15 = sbr.rel (!%p13_p5) target bundleno = 4 (0x4), region = 70 }
 0x125   :  { %378 = vsyncpa [#allocation3], 1 }
 0x126   :  { %380 = vsyncpa [#allocation3 + $0x1], 1 }

</bundles_post_ra>
